<compile_context>
chip_gen: v6e
topology: v6e:2x2x1
jax: 0.10.0
libtpu: 0.0.40
codegen_flags: <defaults>
</compile_context>

<pallas_src>
import functools
import math

import jax
import jax.numpy as jnp
from jax.experimental import pallas as pl
from jax.experimental.pallas import tpu as pltpu

PAD = 128          # lane width; hidden/output feature dims are padded to this
N_LAYERS = 5
TB_MAX = 1024      # max batch-tile rows per grid step
NEG_BIG = -1e30    # finite "mask" bias for pad lanes of the final layer


def _round_up(n, m):
    return ((n + m - 1) // m) * m


def _bf16_elementwise_supported():
    """bf16 VPU/EUP exists on v6e and newer; keep f32 elementwise on v5e and older."""
    try:
        kind = jax.devices()[0].device_kind.lower()
    except Exception:
        return False
    return not any(tag in kind for tag in ("v2", "v3", "v4", "v5"))


def dqn_kernel(x_ref, w_ref, b_ref, out_ref, *, n_in_p, bf16_ew):
    """x_ref: (TB, n_in_p) bf16; w_ref: (5, PAD, PAD) bf16; b_ref: (5, 1, PAD) f32."""
    cdt = jnp.bfloat16 if bf16_ew else jnp.float32   # elementwise compute dtype
    h = x_ref[...]                                    # bf16 activations
    logits = None
    for l in range(N_LAYERS):
        # Layer-0 contracts only over the real input lanes (K = n_in_p).
        w = w_ref[0, :n_in_p, :] if l == 0 else w_ref[l]          # (K, PAD) bf16
        acc = jnp.dot(h, w, preferred_element_type=jnp.float32)   # f32 MXU accumulate
        a = acc.astype(cdt) + b_ref[l].astype(cdt)                # bias add
        if l < N_LAYERS - 1:
            a = jnp.maximum(a, 0.0)                   # ReLU
            h = a.astype(jnp.bfloat16)                # bf16 feeds the next MXU
        else:
            logits = a                                # pad lanes already ~ -1e30 via bias

    # Numerically-stable softmax; pad lanes underflow to exactly 0 (exp(-1e30 - m)).
    m = jnp.max(logits, axis=1, keepdims=True)
    e = jnp.exp(logits - m)
    denom = jnp.sum(e, axis=1, keepdims=True)
    inv = pl.reciprocal(denom.astype(jnp.float32), approx=True).astype(e.dtype)
    out_ref[...] = (e * inv).astype(out_ref.dtype)


@functools.partial(jax.jit, static_argnames=("n_out", "bf16_ew"))
def dqn_forward(x, w_slab, b_slab, *, n_out, bf16_ew):
    batch, n_in = x.shape
    n_in_p = _round_up(max(n_in, 1), 16)
    assert n_in_p <= PAD, "this kernel assumes n_inputs <= 128"

    # Batch tile: as large as possible up to TB_MAX, minimizing pad rows, multiple of 16.
    n_tiles = -(-batch // TB_MAX)
    tb = _round_up(-(-batch // n_tiles), 16)
    batch_p = _round_up(batch, tb)
    grid = (batch_p // tb,)

    # Only pad batch rows + cast to bf16; feature dim stays at n_in_p (not 128).
    x_p = jnp.zeros((batch_p, n_in_p), jnp.bfloat16)
    x_p = x_p.at[:batch, :n_in].set(x.astype(jnp.bfloat16))

    out = pl.pallas_call(
        functools.partial(dqn_kernel, n_in_p=n_in_p, bf16_ew=bf16_ew),
        out_shape=jax.ShapeDtypeStruct((batch_p, PAD), jnp.bfloat16),
        grid_spec=pltpu.PrefetchScalarGridSpec(
            num_scalar_prefetch=0,
            grid=grid,
            in_specs=[
                pl.BlockSpec((tb, n_in_p), lambda i: (i, 0)),            # x: tiled over batch
                pl.BlockSpec((N_LAYERS, PAD, PAD), lambda i: (0, 0, 0)), # weights: resident
                pl.BlockSpec((N_LAYERS, 1, PAD), lambda i: (0, 0, 0)),   # biases: resident
            ],
            out_specs=pl.BlockSpec((tb, PAD), lambda i: (i, 0)),
        ),
        compiler_params=pltpu.CompilerParams(
            dimension_semantics=("parallel",)),
    )(x_p, w_slab, b_slab)
    return out[:batch, :n_out].astype(jnp.float32)


def init_params(key, n_inputs, n_outputs):
    """Deterministic init mimicking PyTorch Linear default (U(+-1/sqrt(fan_in))).
    Returns (w_slab bf16 (5, PAD, PAD), b_slab f32 (5, 1, PAD), raw f32 list)."""
    assert n_inputs <= PAD and n_outputs <= PAD
    dims = [(n_inputs, 120), (120, 60), (60, 60), (60, 60), (60, n_outputs)]
    w_slab = jnp.zeros((N_LAYERS, PAD, PAD), jnp.float32)
    b_slab = jnp.zeros((N_LAYERS, 1, PAD), jnp.float32)
    raw = []
    for l, (fan_in, fan_out) in enumerate(dims):
        key, kw, kb = jax.random.split(key, 3)
        bound = 1.0 / math.sqrt(fan_in)
        w = jax.random.uniform(kw, (fan_in, fan_out), jnp.float32, -bound, bound)
        b = jax.random.uniform(kb, (fan_out,), jnp.float32, -bound, bound)
        raw.append((w, b))
        w_slab = w_slab.at[l, :fan_in, :fan_out].set(w)
        b_slab = b_slab.at[l, 0, :fan_out].set(b)
    # Bake the softmax pad-lane mask into the LAST layer's bias (finite, not -inf).
    # Hidden-layer pad biases stay 0 so ReLU keeps pad lanes at 0.
    b_slab = b_slab.at[N_LAYERS - 1, 0, n_outputs:].set(NEG_BIG)
    return w_slab.astype(jnp.bfloat16), b_slab, raw


def reference_forward(x, raw_params):
    """Pure-JAX reference replicating the PyTorch forward with bf16 matmul inputs
    (f32 accumulate / elementwise), matching the kernel's dominant numeric path."""
    h = x.astype(jnp.bfloat16)
    for i, (w, b) in enumerate(raw_params):
        acc = jnp.dot(h.astype(jnp.float32),
                      w.astype(jnp.bfloat16).astype(jnp.float32)) + b
        if i < len(raw_params) - 1:
            acc = jnp.maximum(acc, 0.0)
            h = acc.astype(jnp.bfloat16)
        else:
            h = acc
    return jax.nn.softmax(h, axis=1)


if __name__ == "__main__":
    key = jax.random.PRNGKey(0)
    key, kx, kp = jax.random.split(key, 3)

    batch, n_inputs, n_outputs = 8, 16, 4
    x = jax.random.normal(kx, (batch, n_inputs), jnp.float32)
    w_slab, b_slab, raw = init_params(kp, n_inputs, n_outputs)

    bf16_ew = _bf16_elementwise_supported()
    out = dqn_forward(x, w_slab, b_slab, n_out=n_outputs, bf16_ew=bf16_ew)
    out = jax.block_until_ready(out)

    ref = reference_forward(x, raw)
    assert out.shape == (batch, n_outputs)
    assert jnp.allclose(out, ref, atol=2e-2, rtol=2e-2), "mismatch vs reference"
    assert jnp.allclose(jnp.sum(out, axis=1), 1.0, atol=2e-2), "softmax rows must sum to ~1"

    print("KERNEL_OK")
</pallas_src>

<mosaic_0001>
module attributes {stable_mosaic.version = 11 : i64} {
  func.func @dqn_kernel(%arg0: i32, %arg1: memref<16x16xbf16, #tpu.memory_space<vmem>>, %arg2: memref<5x128x128xbf16, #tpu.memory_space<vmem>>, %arg3: memref<5x1x128xf32, #tpu.memory_space<vmem>>, %arg4: memref<16x128xbf16, #tpu.memory_space<vmem>>) attributes {dimension_semantics = [#tpu.dimension_semantics<parallel>], iteration_bounds = array<i64: 1>, scalar_prefetch = 0 : i64, scratch_operands = 0 : i64, tpu.core_type = #tpu.core_type<tc>, window_params = [{transform_indices = @transform_0, window_bounds = array<i64: 16, 16>}, {pipeline_mode = #tpu.pipeline_mode<synchronous>, transform_indices = @transform_1, window_bounds = array<i64: 5, 128, 128>}, {pipeline_mode = #tpu.pipeline_mode<synchronous>, transform_indices = @transform_2, window_bounds = array<i64: 5, 1, 128>}, {transform_indices = @transform_3, window_bounds = array<i64: 16, 128>}]} {
    %c0 = arith.constant 0 : index
    %c0_0 = arith.constant 0 : index
    %0 = vector.load %arg1[%c0, %c0_0] : memref<16x16xbf16, #tpu.memory_space<vmem>>, vector<16x16xbf16>
    %c0_1 = arith.constant 0 : index
    %c0_2 = arith.constant 0 : index
    %c0_3 = arith.constant 0 : index
    %1 = vector.load %arg2[%c0_1, %c0_2, %c0_3] : memref<5x128x128xbf16, #tpu.memory_space<vmem>>, vector<1x16x128xbf16>
    %2 = vector.shape_cast %1 : vector<1x16x128xbf16> to vector<16x128xbf16>
    %cst = arith.constant dense<0.000000e+00> : vector<16x128xf32>
    %3 = tpu.matmul %0, %2, %cst {dimension_numbers = #tpu.dot_dimension_numbers<[1], [0], [0], [1], [0, 0, 1, 1], [], []>} : vector<16x16xbf16>, vector<16x128xbf16>, vector<16x128xf32> -> vector<16x128xf32>
    %4 = arith.truncf %3 : vector<16x128xf32> to vector<16x128xbf16>
    %c0_4 = arith.constant 0 : index
    %c0_5 = arith.constant 0 : index
    %c0_6 = arith.constant 0 : index
    %5 = vector.load %arg3[%c0_4, %c0_5, %c0_6] : memref<5x1x128xf32, #tpu.memory_space<vmem>>, vector<1x1x128xf32>
    %6 = vector.shape_cast %5 : vector<1x1x128xf32> to vector<1x128xf32>
    %7 = arith.truncf %6 : vector<1x128xf32> to vector<1x128xbf16>
    %8 = vector.broadcast %7 : vector<1x128xbf16> to vector<16x128xbf16>
    %9 = arith.addf %4, %8 : vector<16x128xbf16>
    %cst_7 = arith.constant 0.000000e+00 : bf16
    %10 = vector.broadcast %cst_7 : bf16 to vector<16x128xbf16>
    %11 = arith.maximumf %9, %10 : vector<16x128xbf16>
    %c1 = arith.constant 1 : index
    %c0_8 = arith.constant 0 : index
    %c0_9 = arith.constant 0 : index
    %12 = vector.load %arg2[%c1, %c0_8, %c0_9] : memref<5x128x128xbf16, #tpu.memory_space<vmem>>, vector<1x128x128xbf16>
    %13 = vector.shape_cast %12 : vector<1x128x128xbf16> to vector<128x128xbf16>
    %cst_10 = arith.constant dense<0.000000e+00> : vector<16x128xf32>
    %14 = tpu.matmul %11, %13, %cst_10 {dimension_numbers = #tpu.dot_dimension_numbers<[1], [0], [0], [1], [0, 0, 1, 1], [], []>} : vector<16x128xbf16>, vector<128x128xbf16>, vector<16x128xf32> -> vector<16x128xf32>
    %15 = arith.truncf %14 : vector<16x128xf32> to vector<16x128xbf16>
    %c1_11 = arith.constant 1 : index
    %c0_12 = arith.constant 0 : index
    %c0_13 = arith.constant 0 : index
    %16 = vector.load %arg3[%c1_11, %c0_12, %c0_13] : memref<5x1x128xf32, #tpu.memory_space<vmem>>, vector<1x1x128xf32>
    %17 = vector.shape_cast %16 : vector<1x1x128xf32> to vector<1x128xf32>
    %18 = arith.truncf %17 : vector<1x128xf32> to vector<1x128xbf16>
    %19 = vector.broadcast %18 : vector<1x128xbf16> to vector<16x128xbf16>
    %20 = arith.addf %15, %19 : vector<16x128xbf16>
    %cst_14 = arith.constant 0.000000e+00 : bf16
    %21 = vector.broadcast %cst_14 : bf16 to vector<16x128xbf16>
    %22 = arith.maximumf %20, %21 : vector<16x128xbf16>
    %c2 = arith.constant 2 : index
    %c0_15 = arith.constant 0 : index
    %c0_16 = arith.constant 0 : index
    %23 = vector.load %arg2[%c2, %c0_15, %c0_16] : memref<5x128x128xbf16, #tpu.memory_space<vmem>>, vector<1x128x128xbf16>
    %24 = vector.shape_cast %23 : vector<1x128x128xbf16> to vector<128x128xbf16>
    %cst_17 = arith.constant dense<0.000000e+00> : vector<16x128xf32>
    %25 = tpu.matmul %22, %24, %cst_17 {dimension_numbers = #tpu.dot_dimension_numbers<[1], [0], [0], [1], [0, 0, 1, 1], [], []>} : vector<16x128xbf16>, vector<128x128xbf16>, vector<16x128xf32> -> vector<16x128xf32>
    %26 = arith.truncf %25 : vector<16x128xf32> to vector<16x128xbf16>
    %c2_18 = arith.constant 2 : index
    %c0_19 = arith.constant 0 : index
    %c0_20 = arith.constant 0 : index
    %27 = vector.load %arg3[%c2_18, %c0_19, %c0_20] : memref<5x1x128xf32, #tpu.memory_space<vmem>>, vector<1x1x128xf32>
    %28 = vector.shape_cast %27 : vector<1x1x128xf32> to vector<1x128xf32>
    %29 = arith.truncf %28 : vector<1x128xf32> to vector<1x128xbf16>
    %30 = vector.broadcast %29 : vector<1x128xbf16> to vector<16x128xbf16>
    %31 = arith.addf %26, %30 : vector<16x128xbf16>
    %cst_21 = arith.constant 0.000000e+00 : bf16
    %32 = vector.broadcast %cst_21 : bf16 to vector<16x128xbf16>
    %33 = arith.maximumf %31, %32 : vector<16x128xbf16>
    %c3 = arith.constant 3 : index
    %c0_22 = arith.constant 0 : index
    %c0_23 = arith.constant 0 : index
    %34 = vector.load %arg2[%c3, %c0_22, %c0_23] : memref<5x128x128xbf16, #tpu.memory_space<vmem>>, vector<1x128x128xbf16>
    %35 = vector.shape_cast %34 : vector<1x128x128xbf16> to vector<128x128xbf16>
    %cst_24 = arith.constant dense<0.000000e+00> : vector<16x128xf32>
    %36 = tpu.matmul %33, %35, %cst_24 {dimension_numbers = #tpu.dot_dimension_numbers<[1], [0], [0], [1], [0, 0, 1, 1], [], []>} : vector<16x128xbf16>, vector<128x128xbf16>, vector<16x128xf32> -> vector<16x128xf32>
    %37 = arith.truncf %36 : vector<16x128xf32> to vector<16x128xbf16>
    %c3_25 = arith.constant 3 : index
    %c0_26 = arith.constant 0 : index
    %c0_27 = arith.constant 0 : index
    %38 = vector.load %arg3[%c3_25, %c0_26, %c0_27] : memref<5x1x128xf32, #tpu.memory_space<vmem>>, vector<1x1x128xf32>
    %39 = vector.shape_cast %38 : vector<1x1x128xf32> to vector<1x128xf32>
    %40 = arith.truncf %39 : vector<1x128xf32> to vector<1x128xbf16>
    %41 = vector.broadcast %40 : vector<1x128xbf16> to vector<16x128xbf16>
    %42 = arith.addf %37, %41 : vector<16x128xbf16>
    %cst_28 = arith.constant 0.000000e+00 : bf16
    %43 = vector.broadcast %cst_28 : bf16 to vector<16x128xbf16>
    %44 = arith.maximumf %42, %43 : vector<16x128xbf16>
    %c4 = arith.constant 4 : index
    %c0_29 = arith.constant 0 : index
    %c0_30 = arith.constant 0 : index
    %45 = vector.load %arg2[%c4, %c0_29, %c0_30] : memref<5x128x128xbf16, #tpu.memory_space<vmem>>, vector<1x128x128xbf16>
    %46 = vector.shape_cast %45 : vector<1x128x128xbf16> to vector<128x128xbf16>
    %cst_31 = arith.constant dense<0.000000e+00> : vector<16x128xf32>
    %47 = tpu.matmul %44, %46, %cst_31 {dimension_numbers = #tpu.dot_dimension_numbers<[1], [0], [0], [1], [0, 0, 1, 1], [], []>} : vector<16x128xbf16>, vector<128x128xbf16>, vector<16x128xf32> -> vector<16x128xf32>
    %48 = arith.truncf %47 : vector<16x128xf32> to vector<16x128xbf16>
    %c4_32 = arith.constant 4 : index
    %c0_33 = arith.constant 0 : index
    %c0_34 = arith.constant 0 : index
    %49 = vector.load %arg3[%c4_32, %c0_33, %c0_34] : memref<5x1x128xf32, #tpu.memory_space<vmem>>, vector<1x1x128xf32>
    %50 = vector.shape_cast %49 : vector<1x1x128xf32> to vector<1x128xf32>
    %51 = arith.truncf %50 : vector<1x128xf32> to vector<1x128xbf16>
    %52 = vector.broadcast %51 : vector<1x128xbf16> to vector<16x128xbf16>
    %53 = arith.addf %48, %52 : vector<16x128xbf16>
    %cst_35 = arith.constant dense<0xFF80> : vector<16xbf16>
    %54 = vector.multi_reduction <maximumf>, %53, %cst_35 [1] : vector<16x128xbf16> to vector<16xbf16>
    %55 = vector.shape_cast %54 : vector<16xbf16> to vector<16x1xbf16>
    %56 = vector.broadcast %55 : vector<16x1xbf16> to vector<16x128xbf16>
    %57 = arith.subf %53, %56 : vector<16x128xbf16>
    %58 = math.exp %57 : vector<16x128xbf16>
    %59 = arith.extf %58 : vector<16x128xbf16> to vector<16x128xf32>
    %cst_36 = arith.constant dense<0.000000e+00> : vector<16xf32>
    %60 = vector.multi_reduction <add>, %59, %cst_36 [1] : vector<16x128xf32> to vector<16xf32>
    %61 = vector.shape_cast %60 : vector<16xf32> to vector<16x1xf32>
    %62 = arith.truncf %61 : vector<16x1xf32> to vector<16x1xbf16>
    %63 = arith.extf %62 : vector<16x1xbf16> to vector<16x1xf32>
    %64 = tpu.reciprocal %63 {approx = true} : vector<16x1xf32> -> vector<16x1xf32>
    %65 = arith.truncf %64 : vector<16x1xf32> to vector<16x1xbf16>
    %66 = vector.broadcast %65 : vector<16x1xbf16> to vector<16x128xbf16>
    %67 = arith.mulf %58, %66 : vector<16x128xbf16>
    %c0_37 = arith.constant 0 : index
    %c0_38 = arith.constant 0 : index
    %68 = vector.load %arg4[%c0_37, %c0_38] : memref<16x128xbf16, #tpu.memory_space<vmem>>, vector<16x128xbf16>
    tpu.vector_store %arg4[%c0_37, %c0_38], %67 {strides = array<i32>} : memref<16x128xbf16, #tpu.memory_space<vmem>>, vector<16x128xbf16>,
    return
  }
  func.func @transform_0(%arg0: i32) -> (i32, i32) {
    %c0_i32 = arith.constant 0 : i32
    %c0_i32_0 = arith.constant 0 : i32
    return %arg0, %c0_i32 : i32, i32
  }
  func.func @transform_1(%arg0: i32) -> (i32, i32, i32) {
    %c0_i32 = arith.constant 0 : i32
    %c0_i32_0 = arith.constant 0 : i32
    %c0_i32_1 = arith.constant 0 : i32
    %c0_i32_2 = arith.constant 0 : i32
    return %c0_i32, %c0_i32_0, %c0_i32_1 : i32, i32, i32
  }
  func.func @transform_2(%arg0: i32) -> (i32, i32, i32) {
    %c0_i32 = arith.constant 0 : i32
    %c0_i32_0 = arith.constant 0 : i32
    %c0_i32_1 = arith.constant 0 : i32
    %c0_i32_2 = arith.constant 0 : i32
    return %c0_i32, %c0_i32_0, %c0_i32_1 : i32, i32, i32
  }
  func.func @transform_3(%arg0: i32) -> (i32, i32) {
    %c0_i32 = arith.constant 0 : i32
    %c0_i32_0 = arith.constant 0 : i32
    return %arg0, %c0_i32 : i32, i32
  }
}

</mosaic_0001>

<bundles_post_ra>
// kernel: dqn_forward.1
= control target key start
LH: loop header
LB: loop body
LE: loop exit
PB: predicated region body
PF: predicated region fallthrough
CT: control target
= control target key end

     0   :  { %8 = vsyncpa [#allocation3], 0  ;;  %s842_s12 = smov [#allocation2]   ;;  %s949_s0 = inlined_call_operand.vmem [shape: bf16[16,16], index: 0, kind: input, shape index: {}]   ;;  %s950_s1 = inlined_call_operand.hbm [shape: bf16[5,128,128], index: 1, kind: input, shape index: {}]   ;;  %s951_s2 = inlined_call_operand.vmem [shape: f32[5,1,128], index: 2, kind: input, shape index: {}]   ;;  %s952_s3 = inlined_call_operand.vmem [shape: bf16[16,128], index: 3, kind: output, shape index: {}]  }
   0x1   :  { %s16_s13 = sshll.u32 %s842_s12, 4  ;;  %s17_s13 = int_to_ptr.vmem [resolvable:$true] %s16_s13 }
   0x2   :  { %s828_s14 = scalar_lea.vmem %s17_s13, 5120  ;;  %p833_p1 = scmp.lt.s32.totalorder %s17_s13, %s17_s13 }
   0x3   :  { %p829_p0 = scmp.ne.s32.totalorder %s17_s13, %s828_s14  ;;  %p834_p2 = scmp.lt.s32.totalorder %s828_s14, %s828_s14 }
   0x5   :  { %p835_p3 = por %p834_p2, %p833_p1 }
   0x7   :  { %p836_p4 = pnand %p835_p3, %p829_p0 }
   0x9   :  { %839 = shalt.err (!%p836_p4)
}
   0xa   :  { %s843_s15 = smov 64   ;;  %s844_s16 = smov 4  }
   0xb   :  { %22 = dma.hbm_to_vmem [thread:$0]  %s950_s1, 5120, %s17_s13, [#allocation3], %s843_s15, %s843_s15, %s844_s16  }
   0xc   :  { %840 = dma.done.wait [#allocation3], 5120  }
   0xd   :  { %841 = vsyncadd [#allocation3], 4294962176  ;;  %v845_v0 = vmov 0.0   ;;  %vm846_vm0 = vmmov 0   ;;  %v780_v1 = vld [vmem:[#allocation2] sm:$0xff]   ;;  %vm44_vm1 = vcmask 130048   ;;  %v95_v16 = vlaneseq }
   0xe   :  { %688 = vmatprep.subr.bf16.mxu0 %v845_v0  ;;  %690 = vmatprep.mubr.msk.bf16.mxu0 %vm846_vm0, %v845_v0  ;;  %v781_v2 = vld [vmem:[%s949_s0] sm:$0xff]   ;;  %v782_v3 = vld [vmem:[#allocation2 + $0x78] sm:$0xff]   ;;  %v783_v4 = vld [vmem:[#allocation2 + $0x70] sm:$0xff]   ;;  %v847_v29 = vmov 0  }
   0xf   :  { %694 = vmatprep.subr.bf16.mxu1 %v845_v0  ;;  %710 = vmatprep.mubr.msk.bf16.mxu1 %vm846_vm0, %v845_v0  ;;  %v784_v5 = vld [vmem:[#allocation2 + $0x68] sm:$0xff]   ;;  %v785_v6 = vld [vmem:[#allocation2 + $0x60] sm:$0xff]   ;;  %v786_v7 = vld [vmem:[#allocation2 + $0x58] sm:$0xff]   ;;  %v96_v19 = vshrl.u32 %v95_v16, 7 }
  0x10   :  { %689 = vmatpush3.bf16.msra.mxu0 %v780_v1  ;;  %695 = vmatpush3.bf16.msra.mxu1 %v782_v3  ;;  %v787_v8 = vld [vmem:[#allocation2 + $0x50] sm:$0xff]   ;;  %v788_v9 = vld [vmem:[#allocation2 + $0x48] sm:$0xff]   ;;  %v789_v10 = vld [vmem:[#allocation2 + $0x40] sm:$0xff]  }
  0x11   :  { %714 = vmatprep.subr.bf16.mxu0 %v845_v0  ;;  %696 = vmatprep.subr.bf16.mxu1 %v845_v0  ;;  %v790_v11 = vld [vmem:[#allocation2 + $0xb8] sm:$0xff]   ;;  %v791_v12 = vld [vmem:[#allocation2 + $0xb0] sm:$0xff]   ;;  %v792_v13 = vld [vmem:[#allocation2 + $0xa8] sm:$0xff]   ;;  %v899_v21 = vsub.s32 0, %v96_v19 }
  0x12   :  { %v793_v14 = vld [vmem:[#allocation2 + $0xa0] sm:$0xff]   ;;  %v794_v15 = vld [vmem:[#allocation2 + $0x98] sm:$0xff]   ;;  %v795_v31 = vld [vmem:[#allocation2 + $0x90] sm:$0xff]  }
  0x13   :  { %691 = vmatmul.mubr.msk.bf16.vlgmr.msra.gmra.mxu0 %vm44_vm1, %v781_v2  ;;  %v90_v17 = vld [vmem:[%s951_s2] sm:$0x1]  ;;  %v796_v32 = vld [vmem:[#allocation2 + $0x88] sm:$0xff]   ;;  %v798_v34 = vld [vmem:[#allocation2 + $0xf8] sm:$0xff]  }
  0x14   :  { %730 = vmatprep.mubr.msk.bf16.mxu0 %vm846_vm0, %v845_v0  ;;  %697 = vmatpush3.bf16.msra.mxu1 %v783_v4  ;;  %v91_v18 = vpack.c.bf16 %v90_v17, %v90_v17  ;;  %v797_v33 = vld [vmem:[#allocation2 + $0x80] sm:$0xff]   ;;  %v799_v35 = vld [vmem:[#allocation2 + $0xf0] sm:$0xff]   ;;  %v800_v36 = vld [vmem:[#allocation2 + $0xe8] sm:$0xff]  }
  0x15   :  { %698 = vmatprep.subr.bf16.mxu1 %v845_v0  ;;  %715 = vmatpush3.bf16.msra.mxu0 %v790_v11  ;;  %v801_v37 = vld [vmem:[#allocation2 + $0xe0] sm:$0xff]   ;;  %v802_v38 = vld [vmem:[#allocation2 + $0xd8] sm:$0xff]   ;;  %v803_v50 = vld [vmem:[#allocation2 + $0xd0] sm:$0xff]  }
  0x16   :  { %716 = vmatprep.subr.bf16.mxu0 %v845_v0  ;;  %v93_v20 = vpack.i.b16 %v91_v18, %v91_v18  ;;  %v620_v39 = vld [vmem:[%s951_s2 + $0x1] sm:$0x1]  ;;  %v804_v51 = vld [vmem:[#allocation2 + $0xc8] sm:$0xff]   ;;  %v806_v53 = vld [vmem:[#allocation2 + $0x138] sm:$0xff]  }
  0x17   :  { %v210_v40 = vpack.c.bf16 %v620_v39, %v620_v39  ;;  %v805_v52 = vld [vmem:[#allocation2 + $0xc0] sm:$0xff]   ;;  %v807_v54 = vld [vmem:[#allocation2 + $0x130] sm:$0xff]   ;;  %v808_v55 = vld [vmem:[#allocation2 + $0x128] sm:$0xff]  }
  0x18   :  { %699 = vmatpush3.bf16.msra.mxu1 %v784_v5  ;;  %v98_v24 = vrot.slane %v93_v20, %v899_v21  ;;  %v809_v56 = vld [vmem:[#allocation2 + $0x120] sm:$0xff]   ;;  %v810_v57 = vld [vmem:[#allocation2 + $0x118] sm:$0xff]  }
  0x19   :  { %700 = vmatprep.subr.bf16.mxu1 %v845_v0  ;;  %717 = vmatpush3.bf16.msra.mxu0 %v791_v12  ;;  %v212_v41 = vpack.i.b16 %v210_v40, %v210_v40  ;;  %v629_v58 = vld [vmem:[%s951_s2 + $0x2] sm:$0x1] }
  0x1a   :  { %718 = vmatprep.subr.bf16.mxu0 %v845_v0  ;;  %v329_v59 = vpack.c.bf16 %v629_v58, %v629_v58 }
  0x1b   :  { %v217_v44 = vrot.slane %v212_v41, %v899_v21 }
  0x1c   :  { %701 = vmatpush3.bf16.msra.mxu1 %v785_v6  ;;  %v331_v60 = vpack.i.b16 %v329_v59, %v329_v59  ;;  %v811_v6 = vld [vmem:[#allocation2 + $0x110] sm:$0xff]  }
  0x1d   :  { %702 = vmatprep.subr.bf16.mxu1 %v845_v0  ;;  %719 = vmatpush3.bf16.msra.mxu0 %v792_v13 }
  0x1e   :  { %720 = vmatprep.subr.bf16.mxu0 %v845_v0  ;;  %v336_v63 = vrot.slane %v331_v60, %v899_v21 }
  0x20   :  { %703 = vmatpush3.bf16.msra.mxu1 %v786_v7  ;;  %v812_v7 = vld [vmem:[#allocation2 + $0x108] sm:$0xff]  }
  0x21   :  { %704 = vmatprep.subr.bf16.mxu1 %v845_v0  ;;  %721 = vmatpush3.bf16.msra.mxu0 %v793_v14 }
  0x22   :  { %722 = vmatprep.subr.bf16.mxu0 %v845_v0 }
  0x24   :  { %705 = vmatpush3.bf16.msra.mxu1 %v787_v8  ;;  %v813_v8 = vld [vmem:[#allocation2 + $0x100] sm:$0xff]  }
  0x25   :  { %706 = vmatprep.subr.bf16.mxu1 %v845_v0  ;;  %723 = vmatpush3.bf16.msra.mxu0 %v794_v15 }
  0x26   :  { %724 = vmatprep.subr.bf16.mxu0 %v845_v0 }
  0x28   :  { %707 = vmatpush3.bf16.msra.mxu1 %v788_v9  ;;  %v638_v9 = vld [vmem:[%s951_s2 + $0x3] sm:$0x1] }
  0x29   :  { %708 = vmatprep.subr.bf16.mxu1 %v845_v0  ;;  %725 = vmatpush3.bf16.msra.mxu0 %v795_v31 }
  0x2a   :  { %726 = vmatprep.subr.bf16.mxu0 %v845_v0 }
  0x2c   :  { %709 = vmatpush3.bf16.msra.mxu1 %v789_v10  ;;  %v448_v10 = vpack.c.bf16 %v638_v9, %v638_v9 }
  0x2d   :  { %734 = vmatprep.subr.bf16.mxu1 %v845_v0  ;;  %727 = vmatpush3.bf16.msra.mxu0 %v796_v32 }
  0x2e   :  { %728 = vmatprep.subr.bf16.mxu0 %v845_v0  ;;  %v450_v11 = vpack.i.b16 %v448_v10, %v448_v10 }
  0x30   :  { %v455_v14 = vrot.slane %v450_v11, %v899_v21 }
  0x31   :  { %729 = vmatpush3.bf16.msra.mxu0 %v797_v33 }
  0x32   :  { %754 = vmatprep.subr.bf16.mxu0 %v845_v0 }
  0xd3   :  { %v82_v22 = vpop.f32.mrf.mxu0 }
  0xd5   :  { %v692_v23 = vpop.f32.mrf.mxu0 }
  0xd7   :  { %v85_v25 = vpop.f32.mrf.mxu0 }
  0xd8   :  { %v89_v26 = vpack.c.bf16 %v85_v25, %v82_v22 }
  0xd9   :  { %v693_v27 = vpop.f32.mrf.mxu0 }
  0xda   :  { %v99_v28 = vadd.bf16 %v98_v24, %v89_v26 }
  0xdc   :  { %v100_v30 = vmax.bf16 %v847_v29, %v99_v28 }
  0xde   :  { %711 = vmatmul.mubr.bf16.vlgmr.msra.gmra.mxu1 %v100_v30 }
  0xdf   :  { %750 = vmatprep.mubr.msk.bf16.mxu1 %vm846_vm0, %v845_v0  ;;  %735 = vmatpush3.bf16.msra.mxu1 %v798_v34 }
  0xe0   :  { %736 = vmatprep.subr.bf16.mxu1 %v845_v0 }
  0xe3   :  { %737 = vmatpush3.bf16.msra.mxu1 %v799_v35 }
  0xe4   :  { %738 = vmatprep.subr.bf16.mxu1 %v845_v0 }
  0xe7   :  { %739 = vmatpush3.bf16.msra.mxu1 %v800_v36 }
  0xe8   :  { %740 = vmatprep.subr.bf16.mxu1 %v845_v0 }
  0xeb   :  { %741 = vmatpush3.bf16.msra.mxu1 %v801_v37 }
  0xec   :  { %742 = vmatprep.subr.bf16.mxu1 %v845_v0 }
  0xef   :  { %743 = vmatpush3.bf16.msra.mxu1 %v802_v38 }
  0xf0   :  { %744 = vmatprep.subr.bf16.mxu1 %v845_v0 }
  0xf3   :  { %745 = vmatpush3.bf16.msra.mxu1 %v803_v50 }
  0xf4   :  { %746 = vmatprep.subr.bf16.mxu1 %v845_v0 }
  0xf7   :  { %747 = vmatpush3.bf16.msra.mxu1 %v804_v51 }
  0xf8   :  { %748 = vmatprep.subr.bf16.mxu1 %v845_v0 }
  0xfb   :  { %749 = vmatpush3.bf16.msra.mxu1 %v805_v52 }
 0x19e   :  { %v200_v42 = vpop.f32.mrf.mxu1 }
 0x1a0   :  { %v712_v43 = vpop.f32.mrf.mxu1 }
 0x1a2   :  { %v203_v45 = vpop.f32.mrf.mxu1 }
 0x1a3   :  { %v207_v46 = vpack.c.bf16 %v203_v45, %v200_v42 }
 0x1a4   :  { %v713_v47 = vpop.f32.mrf.mxu1 }
 0x1a5   :  { %v218_v48 = vadd.bf16 %v217_v44, %v207_v46 }
 0x1a7   :  { %v219_v49 = vmax.bf16 %v847_v29, %v218_v48 }
 0x1a9   :  { %731 = vmatmul.mubr.bf16.vlgmr.msra.gmra.mxu0 %v219_v49 }
 0x1aa   :  { %770 = vmatprep.mubr.msk.bf16.mxu0 %vm846_vm0, %v845_v0  ;;  %755 = vmatpush3.bf16.msra.mxu0 %v806_v53 }
 0x1ab   :  { %756 = vmatprep.subr.bf16.mxu0 %v845_v0 }
 0x1ae   :  { %757 = vmatpush3.bf16.msra.mxu0 %v807_v54 }
 0x1af   :  { %758 = vmatprep.subr.bf16.mxu0 %v845_v0 }
 0x1b2   :  { %759 = vmatpush3.bf16.msra.mxu0 %v808_v55 }
 0x1b3   :  { %760 = vmatprep.subr.bf16.mxu0 %v845_v0 }
 0x1b6   :  { %761 = vmatpush3.bf16.msra.mxu0 %v809_v56 }
 0x1b7   :  { %762 = vmatprep.subr.bf16.mxu0 %v845_v0 }
 0x1ba   :  { %763 = vmatpush3.bf16.msra.mxu0 %v810_v57 }
 0x1bb   :  { %764 = vmatprep.subr.bf16.mxu0 %v845_v0 }
 0x1be   :  { %765 = vmatpush3.bf16.msra.mxu0 %v811_v6 }
 0x1bf   :  { %766 = vmatprep.subr.bf16.mxu0 %v845_v0 }
 0x1c2   :  { %767 = vmatpush3.bf16.msra.mxu0 %v812_v7 }
 0x1c3   :  { %768 = vmatprep.subr.bf16.mxu0 %v845_v0  ;;  %v647_v0 = vld [vmem:[%s951_s2 + $0x4] sm:$0x1] }
 0x1c4   :  { %v567_v20 = vpack.c.bf16 %v647_v0, %v647_v0 }
 0x1c6   :  { %769 = vmatpush3.bf16.msra.mxu0 %v813_v8  ;;  %v569_v22 = vpack.i.b16 %v567_v20, %v567_v20 }
 0x1c8   :  { %v574_v25 = vrot.slane %v569_v22, %v899_v21 }
 0x269   :  { %v319_v61 = vpop.f32.mrf.mxu0 }
 0x26b   :  { %v732_v62 = vpop.f32.mrf.mxu0 }
 0x26d   :  { %v322_v1 = vpop.f32.mrf.mxu0 }
 0x26e   :  { %v326_v2 = vpack.c.bf16 %v322_v1, %v319_v61 }
 0x26f   :  { %v733_v3 = vpop.f32.mrf.mxu0 }
 0x270   :  { %v337_v4 = vadd.bf16 %v336_v63, %v326_v2 }
 0x272   :  { %v338_v5 = vmax.bf16 %v847_v29, %v337_v4 }
 0x274   :  { %751 = vmatmul.mubr.bf16.vlgmr.msra.gmra.mxu1 %v338_v5 }
 0x334   :  { %v438_v12 = vpop.f32.mrf.mxu1 }
 0x336   :  { %v752_v13 = vpop.f32.mrf.mxu1 }
 0x338   :  { %v441_v15 = vpop.f32.mrf.mxu1 }
 0x339   :  { %v445_v16 = vpack.c.bf16 %v441_v15, %v438_v12 }
 0x33a   :  { %v753_v17 = vpop.f32.mrf.mxu1 }
 0x33b   :  { %v456_v18 = vadd.bf16 %v455_v14, %v445_v16 }
 0x33d   :  { %v457_v19 = vmax.bf16 %v847_v29, %v456_v18 }
 0x33f   :  { %771 = vmatmul.mubr.bf16.vlgmr.msra.gmra.mxu0 %v457_v19 }
 0x3ff   :  { %v557_v23 = vpop.f32.mrf.mxu0 }
 0x401   :  { %v772_v24 = vpop.f32.mrf.mxu0 }
 0x403   :  { %v560_v26 = vpop.f32.mrf.mxu0 }
 0x404   :  { %v564_v27 = vpack.c.bf16 %v560_v26, %v557_v23 }
 0x405   :  { %v773_v28 = vpop.f32.mrf.mxu0 }
 0x406   :  { %v575_v30 = vadd.bf16 %v574_v25, %v564_v27 }
 0x408   :  { %576 = vmax.xlane.bf16.xlu0 %v575_v30 }
 0x495   :  { %v577_v31 = vpop.xlane.xlu0 %576 }
 0x496   :  { %v578_v32 = vsub.bf16 %v575_v30, %v577_v31 }
 0x498   :  { %v580_v33 = vmul.bf16 1069105081, %v578_v32 }
 0x49a   :  { %814 = vpow.bf16 %v580_v33 }
 0x4a8   :  { %v815_v29 = vpop.eup %814 }
 0x4a9   :  { %v583_v34 = vunpack.c.h.bf16 %v815_v29  ;;  %v582_v35 = vunpack.c.l.bf16 %v815_v29 }
 0x4ab   :  { %586 = vadd.xlane.f32.xlu1 %v583_v34  ;;  %584 = vadd.xlane.f32.xlu0 %v582_v35 }
 0x534   :  { %v587_v36 = vpop.xlane.xlu1 %586  ;;  %v585_v37 = vpop.xlane.xlu0 %584 }
 0x535   :  { %v588_v38 = vpack.c.bf16 %v587_v36, %v585_v37 }
 0x537   :  { %v589_v39 = vunpack.c.l.bf16 %v588_v38  ;;  %v590_v40 = vunpack.c.h.bf16 %v588_v38 }
 0x539   :  { %816 = vrcp.f32 %v589_v39 }
 0x53a   :  { %818 = vrcp.f32 %v590_v40 }
 0x546   :  { %v817_v21 = vpop.eup %816 }
 0x547   :  { %v819_v41 = vpop.eup %818 }
 0x548   :  { %v593_v42 = vpack.c.bf16 %v819_v41, %v817_v21 }
 0x54a   :  { %v594_v43 = vmul.bf16 %v815_v29, %v593_v42 }
 0x54c   :  { %v648_v44 = vcombine.low %v594_v43, %v594_v43  ;;  %v649_v45 = vcombine.high %v594_v43, %v594_v43 }
 0x54e   :  { %602 = vst [vmem:[%s952_s3] sm:$0xf] %v648_v44  ;;  %603 = vst [vmem:[%s952_s3 + $0x4] sm:$0xf] %v649_v45 }
 0x54f   :  { %608 = vsyncpa [#allocation3], 1 }

</bundles_post_ra>
